<compile_context>
chip_gen: v5e
topology: v5e:2x2
jax: 0.10.0
libtpu: 0.0.40
codegen_flags: <defaults>
</compile_context>

<pallas_src>
import functools

import jax
import jax.numpy as jnp
from jax.experimental import pallas as pl
from jax.experimental.pallas import tpu as pltpu

# ---- module hyper-parameters -------------------------------------------------
NUM_OBS = 16
POLICY_HIDDEN_DIM = (32, 32)   # hidden1: NUM_OBS->32 ; hidden: 32->32 (one layer)
NUM_ACT = 8
MIN_LOG_STD = -20.0
MAX_LOG_STD = 2.0

BATCH = 8

H0, H1 = POLICY_HIDDEN_DIM
OUT_W = 3 * NUM_ACT            # action | mu | std packed along lanes

# ---- packed parameter slab layout (all sections 8-row aligned) ---------------
P_COLS = max(H0, H1, 2 * NUM_ACT)   # 32 lanes
R_W1 = 0                            # rows [0, 16):   W1  (NUM_OBS, H0)
R_B1 = 16                           # row 16:         b1  (H0,)          (pad to 24)
R_W2 = 24                           # rows [24, 56):  W2  (H0, H1)
R_B2 = 56                           # row 56:         b2  (H1,)          (pad to 64)
R_WH = 64                           # rows [64, 96):  [Wmu | Wls]  (H1, 2*NUM_ACT)
R_BH = 96                           # row 96:         [bmu | bls]        (pad to 104)
P_ROWS = 104


def _round_up(n, m):
    return ((n + m - 1) // m) * m


def policy_kernel(x_ref, noise_ref, p_ref, out_ref):
    x = x_ref[...]                                   # (TB, NUM_OBS)
    noise = noise_ref[...]                           # (TB, NUM_ACT)

    # Static, sublane-aligned views into the resident parameter slab.
    w1 = p_ref[R_W1:R_W1 + NUM_OBS, :H0]             # (NUM_OBS, H0)
    b1 = p_ref[R_B1:R_B1 + 1, :H0]                   # (1, H0)
    w2 = p_ref[R_W2:R_W2 + H0, :H1]                  # (H0, H1)
    b2 = p_ref[R_B2:R_B2 + 1, :H1]                   # (1, H1)
    wh = p_ref[R_WH:R_WH + H1, :]                    # (H1, P_COLS), cols >=16 are zero
    bh = p_ref[R_BH:R_BH + 1, :]                     # (1, P_COLS)

    # Trunk: Linear -> ReLU -> Linear -> ReLU (all f32, MXU dots with f32 accumulate)
    h = jnp.dot(x, w1, preferred_element_type=jnp.float32) + b1
    h = jnp.maximum(h, 0.0)
    h = jnp.dot(h, w2, preferred_element_type=jnp.float32) + b2
    h = jnp.maximum(h, 0.0)

    # Fused mu / log_std heads: one matmul, then split the lanes.
    head = jnp.dot(h, wh, preferred_element_type=jnp.float32) + bh   # (TB, P_COLS)
    mu = jnp.tanh(head[:, :NUM_ACT])
    log_std = MIN_LOG_STD + (jnp.tanh(head[:, NUM_ACT:2 * NUM_ACT]) + 1.0) * (
        (MAX_LOG_STD - MIN_LOG_STD) * 0.5)
    std = jnp.exp(log_std)

    # Normal(mu, std).sample() == mu + std * eps
    action = mu + std * noise

    # Single lane-packed store: [action | mu | std]
    out_ref[...] = jnp.concatenate([action, mu, std], axis=-1)


def pack_params(params):
    """Packs the 8 weight/bias arrays into one lane-padded [P_ROWS, P_COLS] slab."""
    slab = jnp.zeros((P_ROWS, P_COLS), jnp.float32)
    slab = slab.at[R_W1:R_W1 + NUM_OBS, :H0].set(params["w1"])
    slab = slab.at[R_B1, :H0].set(params["b1"].reshape(-1))
    slab = slab.at[R_W2:R_W2 + H0, :H1].set(params["w2"])
    slab = slab.at[R_B2, :H1].set(params["b2"].reshape(-1))
    slab = slab.at[R_WH:R_WH + H1, :NUM_ACT].set(params["wmu"])
    slab = slab.at[R_WH:R_WH + H1, NUM_ACT:2 * NUM_ACT].set(params["wls"])
    slab = slab.at[R_BH, :NUM_ACT].set(params["bmu"].reshape(-1))
    slab = slab.at[R_BH, NUM_ACT:2 * NUM_ACT].set(params["bls"].reshape(-1))
    return slab


@functools.partial(jax.jit, static_argnames=("tile_b",))
def policy_forward(x, param_slab, noise, tile_b=None):
    """Runs the whole policy forward pass in one Pallas kernel.

    Returns (action, mu, std); (mu, std) parameterize the Normal the PyTorch
    module returns as `dist`.
    """
    b = x.shape[0]
    if tile_b is None:
        tile_b = min(_round_up(max(b, 8), 8), 256)   # sublane-aligned batch tile
    bp = _round_up(b, tile_b)
    if bp != b:
        x = jnp.pad(x, ((0, bp - b), (0, 0)))
        noise = jnp.pad(noise, ((0, bp - b), (0, 0)))

    grid = (bp // tile_b,)

    out = pl.pallas_call(
        policy_kernel,
        out_shape=jax.ShapeDtypeStruct((bp, OUT_W), jnp.float32),
        grid=grid,
        in_specs=[
            pl.BlockSpec((tile_b, NUM_OBS), lambda i: (i, 0)),      # x: batch-tiled
            pl.BlockSpec((tile_b, NUM_ACT), lambda i: (i, 0)),      # noise: batch-tiled
            pl.BlockSpec((P_ROWS, P_COLS), lambda i: (0, 0)),       # params: resident
        ],
        out_specs=pl.BlockSpec((tile_b, OUT_W), lambda i: (i, 0)),  # packed output
        compiler_params=pltpu.CompilerParams(
            dimension_semantics=("parallel",),                       # v7x: 2 TCs
        ),
    )(x, noise, param_slab)

    out = out[:b]
    action = out[:, :NUM_ACT]
    mu = out[:, NUM_ACT:2 * NUM_ACT]
    std = out[:, 2 * NUM_ACT:]
    return action, mu, std


def init_params(key):
    """Deterministic synthetic parameter init (shapes match the PyTorch module)."""
    ks = jax.random.split(key, 8)

    def linear(kw, kb, fan_in, fan_out):
        scale = 1.0 / jnp.sqrt(jnp.float32(fan_in))
        w = jax.random.uniform(kw, (fan_in, fan_out), jnp.float32, -scale, scale)
        b = jax.random.uniform(kb, (1, fan_out), jnp.float32, -scale, scale)
        return w, b

    w1, b1 = linear(ks[0], ks[1], NUM_OBS, H0)
    w2, b2 = linear(ks[2], ks[3], H0, H1)
    wmu, bmu = linear(ks[4], ks[5], H1, NUM_ACT)
    wls, bls = linear(ks[6], ks[7], H1, NUM_ACT)
    return {
        "w1": w1, "b1": b1,
        "w2": w2, "b2": b2,
        "wmu": wmu, "bmu": bmu,
        "wls": wls, "bls": bls,
    }


def reference_forward(x, params, noise):
    """Pure-JAX reference for correctness checking."""
    h = jnp.maximum(x @ params["w1"] + params["b1"], 0.0)
    h = h @ params["w2"] + params["b2"]
    h = jnp.maximum(h, 0.0)
    mu = jnp.tanh(h @ params["wmu"] + params["bmu"])
    log_std = MIN_LOG_STD + (jnp.tanh(h @ params["wls"] + params["bls"]) + 1.0) \
        * (MAX_LOG_STD - MIN_LOG_STD) / 2.0
    std = jnp.exp(log_std)
    action = mu + std * noise
    return action, mu, std


if __name__ == "__main__":
    key = jax.random.PRNGKey(0)
    k_params, k_x, k_noise = jax.random.split(key, 3)

    params = init_params(k_params)
    param_slab = pack_params(params)

    x = jax.random.normal(k_x, (BATCH, NUM_OBS), jnp.float32)
    # Noise for dist.sample(); drawn outside the kernel for determinism.
    # TODO(synk): could be generated in-kernel via pltpu.prng_seed/stateful_normal
    # if bitwise parity with an external sampler is not required.
    noise = jax.random.normal(k_noise, (BATCH, NUM_ACT), jnp.float32)

    action, mu, std = policy_forward(x, param_slab, noise)
    jax.block_until_ready((action, mu, std))

    # sanity check against pure-JAX reference
    a_ref, mu_ref, std_ref = reference_forward(x, params, noise)
    assert jnp.allclose(action, a_ref, atol=1e-5, rtol=1e-5)
    assert jnp.allclose(mu, mu_ref, atol=1e-5, rtol=1e-5)
    assert jnp.allclose(std, std_ref, atol=1e-5, rtol=1e-5)

    print("KERNEL_OK")
</pallas_src>

<mosaic_0001>
module attributes {stable_mosaic.version = 11 : i64} {
  func.func @policy_kernel(%arg0: i32, %arg1: memref<8x16xf32, #tpu.memory_space<vmem>>, %arg2: memref<8x8xf32, #tpu.memory_space<vmem>>, %arg3: memref<104x32xf32, #tpu.memory_space<vmem>>, %arg4: memref<8x24xf32, #tpu.memory_space<vmem>>) attributes {dimension_semantics = [#tpu.dimension_semantics<parallel>], iteration_bounds = array<i64: 1>, scalar_prefetch = 0 : i64, scratch_operands = 0 : i64, tpu.core_type = #tpu.core_type<tc>, window_params = [{transform_indices = @transform_0, window_bounds = array<i64: 8, 16>}, {transform_indices = @transform_1, window_bounds = array<i64: 8, 8>}, {pipeline_mode = #tpu.pipeline_mode<synchronous>, transform_indices = @transform_2, window_bounds = array<i64: 104, 32>}, {transform_indices = @transform_3, window_bounds = array<i64: 8, 24>}]} {
    %c0 = arith.constant 0 : index
    %c0_0 = arith.constant 0 : index
    %0 = vector.load %arg1[%c0, %c0_0] : memref<8x16xf32, #tpu.memory_space<vmem>>, vector<8x16xf32>
    %c0_1 = arith.constant 0 : index
    %c0_2 = arith.constant 0 : index
    %1 = vector.load %arg2[%c0_1, %c0_2] : memref<8x8xf32, #tpu.memory_space<vmem>>, vector<8x8xf32>
    %c0_3 = arith.constant 0 : index
    %c0_4 = arith.constant 0 : index
    %2 = vector.load %arg3[%c0_3, %c0_4] : memref<104x32xf32, #tpu.memory_space<vmem>>, vector<16x32xf32>
    %c16 = arith.constant 16 : index
    %c0_5 = arith.constant 0 : index
    %3 = vector.load %arg3[%c16, %c0_5] : memref<104x32xf32, #tpu.memory_space<vmem>>, vector<1x32xf32>
    %c24 = arith.constant 24 : index
    %c0_6 = arith.constant 0 : index
    %4 = vector.load %arg3[%c24, %c0_6] : memref<104x32xf32, #tpu.memory_space<vmem>>, vector<32x32xf32>
    %c56 = arith.constant 56 : index
    %c0_7 = arith.constant 0 : index
    %5 = vector.load %arg3[%c56, %c0_7] : memref<104x32xf32, #tpu.memory_space<vmem>>, vector<1x32xf32>
    %c64 = arith.constant 64 : index
    %c0_8 = arith.constant 0 : index
    %6 = vector.load %arg3[%c64, %c0_8] : memref<104x32xf32, #tpu.memory_space<vmem>>, vector<32x32xf32>
    %c96 = arith.constant 96 : index
    %c0_9 = arith.constant 0 : index
    %7 = vector.load %arg3[%c96, %c0_9] : memref<104x32xf32, #tpu.memory_space<vmem>>, vector<1x32xf32>
    %cst = arith.constant dense<0.000000e+00> : vector<8x32xf32>
    %8 = tpu.matmul %0, %2, %cst {dimension_numbers = #tpu.dot_dimension_numbers<[1], [0], [0], [1], [0, 0, 1, 1], [], []>} : vector<8x16xf32>, vector<16x32xf32>, vector<8x32xf32> -> vector<8x32xf32>
    %9 = vector.broadcast %3 : vector<1x32xf32> to vector<8x32xf32>
    %10 = arith.addf %8, %9 : vector<8x32xf32>
    %cst_10 = arith.constant 0.000000e+00 : f32
    %11 = vector.broadcast %cst_10 : f32 to vector<8x32xf32>
    %12 = arith.maximumf %10, %11 : vector<8x32xf32>
    %cst_11 = arith.constant dense<0.000000e+00> : vector<8x32xf32>
    %13 = tpu.matmul %12, %4, %cst_11 {dimension_numbers = #tpu.dot_dimension_numbers<[1], [0], [0], [1], [0, 0, 1, 1], [], []>} : vector<8x32xf32>, vector<32x32xf32>, vector<8x32xf32> -> vector<8x32xf32>
    %14 = vector.broadcast %5 : vector<1x32xf32> to vector<8x32xf32>
    %15 = arith.addf %13, %14 : vector<8x32xf32>
    %cst_12 = arith.constant 0.000000e+00 : f32
    %16 = vector.broadcast %cst_12 : f32 to vector<8x32xf32>
    %17 = arith.maximumf %15, %16 : vector<8x32xf32>
    %cst_13 = arith.constant dense<0.000000e+00> : vector<8x32xf32>
    %18 = tpu.matmul %17, %6, %cst_13 {dimension_numbers = #tpu.dot_dimension_numbers<[1], [0], [0], [1], [0, 0, 1, 1], [], []>} : vector<8x32xf32>, vector<32x32xf32>, vector<8x32xf32> -> vector<8x32xf32>
    %19 = vector.broadcast %7 : vector<1x32xf32> to vector<8x32xf32>
    %20 = arith.addf %18, %19 : vector<8x32xf32>
    %21 = vector.extract_strided_slice %20 {offsets = [0, 0], sizes = [8, 8], strides = [1, 1]} : vector<8x32xf32> to vector<8x8xf32>
    %22 = math.tanh %21 : vector<8x8xf32>
    %23 = vector.extract_strided_slice %20 {offsets = [0, 8], sizes = [8, 8], strides = [1, 1]} : vector<8x32xf32> to vector<8x8xf32>
    %24 = math.tanh %23 : vector<8x8xf32>
    %cst_14 = arith.constant 1.000000e+00 : f32
    %25 = vector.broadcast %cst_14 : f32 to vector<8x8xf32>
    %26 = arith.addf %24, %25 : vector<8x8xf32>
    %cst_15 = arith.constant 1.100000e+01 : f32
    %27 = vector.broadcast %cst_15 : f32 to vector<8x8xf32>
    %28 = arith.mulf %26, %27 : vector<8x8xf32>
    %cst_16 = arith.constant -2.000000e+01 : f32
    %29 = vector.broadcast %cst_16 : f32 to vector<8x8xf32>
    %30 = arith.addf %29, %28 : vector<8x8xf32>
    %31 = math.exp %30 : vector<8x8xf32>
    %32 = arith.mulf %31, %1 : vector<8x8xf32>
    %33 = arith.addf %22, %32 : vector<8x8xf32>
    %34 = tpu.concatenate %33, %22, %31 in 1 : vector<8x8xf32>, vector<8x8xf32>, vector<8x8xf32> -> vector<8x24xf32>
    %c0_17 = arith.constant 0 : index
    %c0_18 = arith.constant 0 : index
    %35 = vector.load %arg4[%c0_17, %c0_18] : memref<8x24xf32, #tpu.memory_space<vmem>>, vector<8x24xf32>
    tpu.vector_store %arg4[%c0_17, %c0_18], %34 {strides = array<i32>} : memref<8x24xf32, #tpu.memory_space<vmem>>, vector<8x24xf32>,
    return
  }
  func.func @transform_0(%arg0: i32) -> (i32, i32) {
    %c0_i32 = arith.constant 0 : i32
    %c0_i32_0 = arith.constant 0 : i32
    return %arg0, %c0_i32 : i32, i32
  }
  func.func @transform_1(%arg0: i32) -> (i32, i32) {
    %c0_i32 = arith.constant 0 : i32
    %c0_i32_0 = arith.constant 0 : i32
    return %arg0, %c0_i32 : i32, i32
  }
  func.func @transform_2(%arg0: i32) -> (i32, i32) {
    %c0_i32 = arith.constant 0 : i32
    %c0_i32_0 = arith.constant 0 : i32
    %c0_i32_1 = arith.constant 0 : i32
    return %c0_i32, %c0_i32_0 : i32, i32
  }
  func.func @transform_3(%arg0: i32) -> (i32, i32) {
    %c0_i32 = arith.constant 0 : i32
    %c0_i32_0 = arith.constant 0 : i32
    return %arg0, %c0_i32 : i32, i32
  }
}

</mosaic_0001>

<bundles_post_ra>
// kernel: policy_forward.1
= control target key start
LH: loop header
LB: loop body
LE: loop exit
PB: predicated region body
PF: predicated region fallthrough
CT: control target
= control target key end

     0   :  { %vm30_vm0 = vcmask 130048   ;;  %vm56_vm1 = vcmask 261120   ;;  %s150_s10 = smov 8   ;;  %vm129_vm2 = vcmask 64512   ;;  %vm132_vm3 = vcmask 195584   ;;  %s224_s2 = inlined_call_operand.vmem [shape: f32[104,32], index: 2, kind: input, shape index: {}]   ;;  %s225_s0 = inlined_call_operand.vmem [shape: f32[8,16], index: 0, kind: input, shape index: {}]   ;;  %s226_s1 = inlined_call_operand.vmem [shape: f32[8,8], index: 1, kind: input, shape index: {}]   ;;  %s227_s3 = inlined_call_operand.vmem [shape: f32[8,24], index: 3, kind: output, shape index: {}]  }
   0x1   :  { %v17_v0 = vld [vmem:[%s224_s2 + $0x8] sm:$0xff]  ;;  %v16_v1 = vld [vmem:[%s224_s2] sm:$0xff]  ;;  %v22_v3 = vld [vmem:[%s224_s2 + $0x30] sm:$0xff] }
   0x2   :  { %48 = vmatpush.msra.mxu0 %v17_v0  ;;  %v14_v2 = vld [vmem:[%s225_s0] sm:$0xff]  ;;  %72 = vmatpush.msra.mxu1 %v22_v3  ;;  %v21_v4 = vld [vmem:[%s224_s2 + $0x28] sm:$0xff]  ;;  %v19_v6 = vld [vmem:[%s224_s2 + $0x18] sm:$0xff] }
   0x3   :  { %v20_v5 = vld [vmem:[%s224_s2 + $0x20] sm:$0xff]  ;;  %v27_v7 = vld [vmem:[%s224_s2 + $0x58] sm:$0xff]  ;;  %v143_v8 = vld [vmem:[%s224_s2 + $0x10] ss:$0 sm:$0xff] }
   0x4   :  { %49 = vmatpush.msra.mxu0 %v16_v1  ;;  %73 = vmatpush.msra.mxu1 %v21_v4  ;;  %v26_v12 = vld [vmem:[%s224_s2 + $0x50] sm:$0xff]  ;;  %v25_v13 = vld [vmem:[%s224_s2 + $0x48] sm:$0xff]  ;;  %v24_v14 = vld [vmem:[%s224_s2 + $0x40] sm:$0xff] }
   0x5   :  { %138 = vmatmul.msk.f32.vlgmr.msra.gmra.mxu0 %vm30_vm0, %v14_v2  ;;  %97 = vmatpush.msra.mxu2 %v27_v7  ;;  %v15_v15 = vld [vmem:[%s226_s1] sm:$0xff]  ;;  %v144_v16 = vld [vmem:[%s224_s2 + $0x38] ss:$0 sm:$0xff]  ;;  %s151_s1 = smov 120  }
   0x6   :  { %74 = vmatpush.msra.mxu1 %v20_v5  ;;  %112 = vrot.lane.b32.xlu0 %v15_v15, %s150_s10  ;;  %v145_v20 = vld [vmem:[%s224_s2 + $0x60] ss:$0 sm:$0xff] }
   0x7   :  { %98 = vmatpush.msra.mxu2 %v26_v12 }
   0x8   :  { %75 = vmatpush.msra.mxu1 %v19_v6 }
   0x9   :  { %99 = vmatpush.msra.mxu2 %v25_v13 }
   0xb   :  { %100 = vmatpush.msra.mxu2 %v24_v14 }
  0x78   :  { %v113_v28 = vpop.permute.xlu0 %112 }
  0x82   :  { %v51_v9 = vpop.f32.mrf.mxu0 }
  0x83   :  { %v52_v10 = vadd.f32 %v143_v8, %v51_v9 }
  0x85   :  { %v54_v11 = vmax.f32 %v52_v10, 0.0 }
  0x87   :  { %139 = vmatmul.msk.f32.vlgmr.msra.gmra.mxu1 %vm56_vm1, %v54_v11 }
 0x104   :  { %v77_v17 = vpop.f32.mrf.mxu1 }
 0x105   :  { %v78_v18 = vadd.f32 %v144_v16, %v77_v17 }
 0x107   :  { %v80_v19 = vmax.f32 %v78_v18, 0.0 }
 0x109   :  { %140 = vmatmul.msk.f32.vlgmr.msra.gmra.mxu2 %vm56_vm1, %v80_v19 }
 0x18c   :  { %v102_v21 = vpop.f32.mrf.mxu2 }
 0x18d   :  { %v103_v22 = vadd.f32 %v145_v20, %v102_v21 }
 0x18f   :  { %146 = vtanh.f32 %v103_v22 }
 0x195   :  { %v147_v23 = vpop.eup %146 }
 0x196   :  { %122 = vrot.lane.b32.xlu1 %v147_v23, %s150_s10  ;;  %v106_v24 = vadd.f32 1.0, %v147_v23 }
 0x198   :  { %v107_v25 = vmul.f32 11.0, %v106_v24 }
 0x19a   :  { %v108_v26 = vadd.f32 -20.0, %v107_v25 }
 0x19c   :  { %v109_v27 = vmul.f32 1.442695, %v108_v26 }
 0x19e   :  { %148 = vpow2.f32 %v109_v27 }
 0x1a4   :  { %v149_v29 = vpop.eup %148 }
 0x1a5   :  { %v115_v30 = vmul.f32 %v149_v29, %v113_v28  ;;  %126 = vrot.lane.b32.xlu1 %v149_v29, %s150_s10 }
 0x1a7   :  { %117 = vrot.lane.b32.xlu0 %v115_v30, %s151_s1 }
 0x208   :  { %v123_v31 = vpop.permute.xlu1 %122 }
 0x217   :  { %v127_v34 = vpop.permute.xlu1 %126 }
 0x219   :  { %v118_v32 = vpop.permute.xlu0 %117 }
 0x21a   :  { %v120_v33 = vadd.f32 %v147_v23, %v118_v32 }
 0x21c   :  { %v130_v35 = vsel %vm129_vm2, %v120_v33, %v123_v31 }
 0x21d   :  { %v131_v36 = vsel %vm30_vm0, %v130_v35, %v127_v34 }
 0x21e   :  { %133 = vst.msk [vmem:[%s227_s3] sm:$0xff] %vm132_vm3, %v131_v36 }

</bundles_post_ra>
